<compile_context>
chip_gen: v7x
topology: tpu7x:2x2x1
jax: 0.10.0
libtpu: 0.0.40
codegen_flags: <defaults>
</compile_context>

<pallas_src>
import functools
import math

import jax
import jax.numpy as jnp
from jax.experimental import pallas as pl
from jax.experimental.pallas import tpu as pltpu

_LN_EPS = 1e-5
_INV_SQRT2 = 0.7071067811865476
_NEG_INF = -1e30


def _round_up(n, m):
    return (n + m - 1) // m * m


def _cdiv(a, b):
    return (a + b - 1) // b


def _pick_vmem_limit():
    """Generation-aware scoped-VMEM budget (~48 MiB on v7x, ~96 MiB v5e/v6e)."""
    try:
        cap = int(pltpu.get_tpu_info().vmem_capacity_bytes)
        return min((cap * 3) // 4, 100 * 1024 * 1024)
    except Exception:
        return 48 * 1024 * 1024


def _layernorm_f32(x, gamma, beta):
    mu = jnp.mean(x, axis=-1, keepdims=True)
    xc = x - mu
    var = jnp.mean(xc * xc, axis=-1, keepdims=True)
    return xc * jax.lax.rsqrt(var + _LN_EPS) * gamma + beta


def _gelu_exact_f32(x):
    # torch.nn.GELU() default (erf-based).
    return 0.5 * x * (1.0 + jax.lax.erf(x * _INV_SQRT2))


# --------------------------------------------------------------------------
# Kernel 1: qkv = LN1(x) @ W_qkv + b_qkv
#           grid = (row tiles, output-column tiles); qkv stored in bf16.
# --------------------------------------------------------------------------
def ln_qkv_kernel(x_ref, g_ref, be_ref, w_ref, bw_ref, o_ref):
    x = x_ref[...].astype(jnp.float32)
    xn = _layernorm_f32(x, g_ref[...], be_ref[...])
    qkv = jnp.dot(xn.astype(w_ref.dtype), w_ref[...],
                  preferred_element_type=jnp.float32) + bw_ref[...]
    o_ref[...] = qkv.astype(o_ref.dtype)


# --------------------------------------------------------------------------
# Kernel 2: flash-style causal attention, all heads per step.
#           grid = (B, q tiles, kv tiles); reads the (B, T, 3C) qkv array
#           directly (per-head column slices in-kernel), writes y in (B, T, C)
#           layout.  Online softmax state lives in VMEM scratch.
# --------------------------------------------------------------------------
def flash_attn_kernel(q_ref, kv_ref, o_ref, m_ref, l_ref, acc_ref, *,
                      n_head, hd):
    C = n_head * hd
    tq = q_ref.shape[1]
    tk = kv_ref.shape[1]
    qi = pl.program_id(1)
    ki = pl.program_id(2)
    scale = 1.0 / math.sqrt(hd)

    @pl.when(ki == 0)
    def _():
        m_ref[...] = jnp.full_like(m_ref, _NEG_INF)
        l_ref[...] = jnp.zeros_like(l_ref)
        acc_ref[...] = jnp.zeros_like(acc_ref)

    q_start = qi * tq
    k_start = ki * tk

    # kv tiles strictly above the causal diagonal contribute nothing: skip.
    # (kv tile 0 is never skipped, so every row's running max is valid.)
    @pl.when(k_start <= q_start + tq - 1)
    def _():
        qt = q_ref[0]    # (tq, 3C) bf16 (only q columns used)
        kvt = kv_ref[0]  # (tk, 3C) bf16 (k and v columns used)
        row = q_start + jax.lax.broadcasted_iota(jnp.int32, (tq, tk), 0)
        col = k_start + jax.lax.broadcasted_iota(jnp.int32, (tq, tk), 1)
        causal = col <= row
        for h in range(n_head):
            lo = h * hd
            qh = qt[:, lo:lo + hd] * scale             # scale folded into q
            kh = kvt[:, C + lo:C + lo + hd]
            vh = kvt[:, 2 * C + lo:2 * C + lo + hd]
            s = jax.lax.dot_general(qh, kh, (((1,), (1,)), ((), ())),
                                    preferred_element_type=jnp.float32)
            s = jnp.where(causal, s, _NEG_INF)
            m_prev = m_ref[h]                          # (tq, 1) f32
            m_new = jnp.maximum(m_prev, jnp.max(s, axis=-1, keepdims=True))
            alpha = jnp.exp(m_prev - m_new)
            p = jnp.exp(s - m_new)                     # f32 softmax stats
            l_ref[h] = alpha * l_ref[h] + jnp.sum(p, axis=-1, keepdims=True)
            pv = jax.lax.dot_general(p.astype(vh.dtype), vh,
                                     (((1,), (0,)), ((), ())),
                                     preferred_element_type=jnp.float32)
            acc_ref[:, lo:lo + hd] = alpha * acc_ref[:, lo:lo + hd] + pv
            m_ref[h] = m_new

    @pl.when(ki == pl.num_programs(2) - 1)
    def _():
        for h in range(n_head):
            lo = h * hd
            inv_l = pl.reciprocal(l_ref[h], approx=True)   # EUP slot, ~free
            o_ref[0, :, lo:lo + hd] = (acc_ref[:, lo:lo + hd] * inv_l
                                       ).astype(o_ref.dtype)


# --------------------------------------------------------------------------
# Kernel 3: out = x1 + GELU(LN2(x1) @ W1 + b1) @ W2 + b2
#           where x1 = x + y @ W_proj + b_proj is computed in the j==0
#           prologue (attn-proj + residual fused in).  grid = (rows, H tiles).
# --------------------------------------------------------------------------
def proj_ln_mlp_kernel(x_ref, y_ref, wp_ref, bp_ref, g_ref, be_ref,
                       w1_ref, b1_ref, w2_ref, b2_ref, o_ref,
                       x1_ref, xn_ref, acc_ref):
    j = pl.program_id(1)

    @pl.when(j == 0)
    def _():
        proj = jnp.dot(y_ref[...], wp_ref[...],
                       preferred_element_type=jnp.float32)
        x1 = x_ref[...].astype(jnp.float32) + proj + bp_ref[...]
        x1_ref[...] = x1
        xn_ref[...] = _layernorm_f32(x1, g_ref[...], be_ref[...]
                                     ).astype(xn_ref.dtype)
        acc_ref[...] = jnp.zeros_like(acc_ref)

    hpre = jnp.dot(xn_ref[...], w1_ref[...],
                   preferred_element_type=jnp.float32) + b1_ref[...]
    hact = _gelu_exact_f32(hpre)
    acc_ref[...] += jnp.dot(hact.astype(w2_ref.dtype), w2_ref[...],
                            preferred_element_type=jnp.float32)

    @pl.when(j == pl.num_programs(1) - 1)
    def _():
        o_ref[...] = (x1_ref[...] + acc_ref[...] + b2_ref[...]
                      ).astype(o_ref.dtype)


# --------------------------------------------------------------------------
# Wrapper
# --------------------------------------------------------------------------
def block_forward(x, params, n_head, *, tm=256, tn_qkv=512, th=512,
                  tq=256, tk=256, compute_dtype=jnp.bfloat16):
    """x: (B, T, C) f32. Returns (B, T, C) f32."""
    B, T, C = x.shape
    assert C % n_head == 0
    hd = C // n_head
    H = params['w1'].shape[1]
    M = B * T
    n_qkv = 3 * C
    f32 = jnp.float32
    cd = compute_dtype

    vmem_limit = _pick_vmem_limit()

    # Row tiling (no padding; ragged last block rows are dropped on write).
    tm_eff = min(tm, _round_up(M, 16))
    if M >= 32:  # keep >= 2 row blocks so both v7x TensorCores get work
        tm_eff = min(tm_eff, _round_up(_cdiv(M, 2), 16))
    grid_rows = _cdiv(M, tm_eff)

    # QKV output-column tiling, MLP hidden tiling, attention q/kv tiling.
    tn_eff = tn_qkv if (n_qkv % tn_qkv == 0) else n_qkv
    th_eff = th if (H % th == 0) else H
    tq_eff = tq if (T % tq == 0) else T
    tk_eff = tk if (T % tk == 0) else T

    x2d = x.reshape(M, C).astype(f32)
    g1 = params['ln1_g'].reshape(1, C).astype(f32)
    be1 = params['ln1_b'].reshape(1, C).astype(f32)
    g2 = params['ln2_g'].reshape(1, C).astype(f32)
    be2 = params['ln2_b'].reshape(1, C).astype(f32)
    w_qkv = params['w_qkv'].astype(cd)
    b_qkv = params['b_qkv'].reshape(1, n_qkv).astype(f32)
    w_proj = params['w_proj'].astype(cd)
    b_proj = params['b_proj'].reshape(1, C).astype(f32)
    w1 = params['w1'].astype(cd)
    b1 = params['b1'].reshape(1, H).astype(f32)
    w2 = params['w2'].astype(cd)
    b2 = params['b2'].reshape(1, C).astype(f32)

    # --- 1. fused LN1 + QKV projection (bf16 output) ----------------------
    qkv = pl.pallas_call(
        ln_qkv_kernel,
        out_shape=jax.ShapeDtypeStruct((M, n_qkv), cd),
        grid_spec=pltpu.PrefetchScalarGridSpec(
            num_scalar_prefetch=0,
            grid=(grid_rows, n_qkv // tn_eff),
            in_specs=[
                pl.BlockSpec((tm_eff, C), lambda i, j: (i, 0)),
                pl.BlockSpec((1, C), lambda i, j: (0, 0)),
                pl.BlockSpec((1, C), lambda i, j: (0, 0)),
                pl.BlockSpec((C, tn_eff), lambda i, j: (0, j)),
                pl.BlockSpec((1, tn_eff), lambda i, j: (0, j)),
            ],
            out_specs=pl.BlockSpec((tm_eff, tn_eff), lambda i, j: (i, j)),
        ),
        compiler_params=pltpu.CompilerParams(
            dimension_semantics=("parallel", "parallel"),
            vmem_limit_bytes=vmem_limit),
        cost_estimate=pl.CostEstimate(
            flops=2 * M * C * n_qkv,
            transcendentals=0,
            bytes_accessed=(M * C * 4 + grid_rows * C * n_qkv * 2
                            + M * n_qkv * 2)),
    )(x2d, g1, be1, w_qkv, b_qkv)

    # --- 2. flash-style causal attention (no head transposes) -------------
    qkv3 = qkv.reshape(B, T, n_qkv)        # free reshape
    n_q = T // tq_eff
    n_kv = T // tk_eff
    attn_kernel = functools.partial(flash_attn_kernel, n_head=n_head, hd=hd)

    y = pl.pallas_call(
        attn_kernel,
        out_shape=jax.ShapeDtypeStruct((B, T, C), cd),
        grid_spec=pltpu.PrefetchScalarGridSpec(
            num_scalar_prefetch=0,
            grid=(B, n_q, n_kv),
            in_specs=[
                pl.BlockSpec((1, tq_eff, n_qkv), lambda b, qi, ki: (b, qi, 0)),
                pl.BlockSpec((1, tk_eff, n_qkv), lambda b, qi, ki: (b, ki, 0)),
            ],
            out_specs=pl.BlockSpec((1, tq_eff, C),
                                   lambda b, qi, ki: (b, qi, 0)),
            scratch_shapes=[
                pltpu.VMEM((n_head, tq_eff, 1), f32),   # running max
                pltpu.VMEM((n_head, tq_eff, 1), f32),   # running denom
                pltpu.VMEM((tq_eff, C), f32),           # f32 output accum
            ],
        ),
        compiler_params=pltpu.CompilerParams(
            dimension_semantics=("parallel", "parallel", "arbitrary"),
            vmem_limit_bytes=vmem_limit),
    )(qkv3, qkv3)

    # --- 3. fused attn-proj + residual + LN2 + MLP + residual -------------
    y2d = y.reshape(M, C)                   # free reshape
    out2d = pl.pallas_call(
        proj_ln_mlp_kernel,
        out_shape=jax.ShapeDtypeStruct((M, C), f32),
        grid_spec=pltpu.PrefetchScalarGridSpec(
            num_scalar_prefetch=0,
            grid=(grid_rows, H // th_eff),
            in_specs=[
                pl.BlockSpec((tm_eff, C), lambda i, j: (i, 0)),
                pl.BlockSpec((tm_eff, C), lambda i, j: (i, 0)),
                pl.BlockSpec((C, C), lambda i, j: (0, 0)),
                pl.BlockSpec((1, C), lambda i, j: (0, 0)),
                pl.BlockSpec((1, C), lambda i, j: (0, 0)),
                pl.BlockSpec((1, C), lambda i, j: (0, 0)),
                pl.BlockSpec((C, th_eff), lambda i, j: (0, j)),
                pl.BlockSpec((1, th_eff), lambda i, j: (0, j)),
                pl.BlockSpec((th_eff, C), lambda i, j: (j, 0)),
                pl.BlockSpec((1, C), lambda i, j: (0, 0)),
            ],
            out_specs=pl.BlockSpec((tm_eff, C), lambda i, j: (i, 0)),
            scratch_shapes=[
                pltpu.VMEM((tm_eff, C), f32),   # x1 = x + attn proj (residual)
                pltpu.VMEM((tm_eff, C), cd),    # LN2(x1), reused for every j
                pltpu.VMEM((tm_eff, C), f32),   # MLP f32 accumulator
            ],
        ),
        compiler_params=pltpu.CompilerParams(
            dimension_semantics=("parallel", "arbitrary"),
            vmem_limit_bytes=vmem_limit),
        cost_estimate=pl.CostEstimate(
            flops=2 * M * C * C + 4 * M * C * H,
            transcendentals=M * H,
            bytes_accessed=(M * C * 4 + M * C * 2 + C * C * 2
                            + grid_rows * 2 * C * H * 2 + M * C * 4)),
    )(x2d, y2d, w_proj, b_proj, g2, be2, w1, b1, w2, b2)

    return out2d.reshape(B, T, C)


# --------------------------------------------------------------------------
# Pure-JAX f32 reference (mirrors the PyTorch Block forward)
# --------------------------------------------------------------------------
def block_reference(x, p, n_head):
    B, T, C = x.shape
    hd = C // n_head

    def ln(v, g, b):
        mu = v.mean(-1, keepdims=True)
        var = ((v - mu) ** 2).mean(-1, keepdims=True)
        return (v - mu) / jnp.sqrt(var + _LN_EPS) * g + b

    h = ln(x, p['ln1_g'], p['ln1_b'])
    qkv = h @ p['w_qkv'] + p['b_qkv']
    q, k, v = jnp.split(qkv, 3, axis=-1)

    def split_heads(t):
        return t.reshape(B, T, n_head, hd).transpose(0, 2, 1, 3)

    q, k, v = map(split_heads, (q, k, v))
    s = jnp.einsum('bhtd,bhsd->bhts', q, k) / jnp.sqrt(hd)
    mask = jnp.tril(jnp.ones((T, T), dtype=bool))
    s = jnp.where(mask, s, -jnp.inf)
    a = jax.nn.softmax(s, axis=-1)
    y = jnp.einsum('bhts,bhsd->bhtd', a, v)
    y = y.transpose(0, 2, 1, 3).reshape(B, T, C)
    x = x + y @ p['w_proj'] + p['b_proj']

    h2 = ln(x, p['ln2_g'], p['ln2_b'])
    h2 = h2 @ p['w1'] + p['b1']
    h2 = 0.5 * h2 * (1.0 + jax.lax.erf(h2 / jnp.sqrt(2.0)))
    return x + h2 @ p['w2'] + p['b2']


if __name__ == "__main__":
    # Small config: batch=2, seq=8, n_embd=32, n_head=4, hidden=4*n_embd=128,
    # dropout=0.0, bias=True.
    B, T, C, n_head = 2, 8, 32, 4
    H = 4 * C

    keys = jax.random.split(jax.random.PRNGKey(0), 13)
    x = jax.random.normal(keys[0], (B, T, C), dtype=jnp.float32)
    params = dict(
        ln1_g=1.0 + 0.1 * jax.random.normal(keys[1], (C,), jnp.float32),
        ln1_b=0.02 * jax.random.normal(keys[2], (C,), jnp.float32),
        w_qkv=jax.random.normal(keys[3], (C, 3 * C), jnp.float32) / jnp.sqrt(C),
        b_qkv=0.02 * jax.random.normal(keys[4], (3 * C,), jnp.float32),
        w_proj=jax.random.normal(keys[5], (C, C), jnp.float32) / jnp.sqrt(C),
        b_proj=0.02 * jax.random.normal(keys[6], (C,), jnp.float32),
        ln2_g=1.0 + 0.1 * jax.random.normal(keys[7], (C,), jnp.float32),
        ln2_b=0.02 * jax.random.normal(keys[8], (C,), jnp.float32),
        w1=jax.random.normal(keys[9], (C, H), jnp.float32) / jnp.sqrt(C),
        b1=0.02 * jax.random.normal(keys[10], (H,), jnp.float32),
        w2=jax.random.normal(keys[11], (H, C), jnp.float32) / jnp.sqrt(H),
        b2=0.02 * jax.random.normal(keys[12], (C,), jnp.float32),
    )

    out = block_forward(x, params, n_head)
    out = jax.block_until_ready(out)

    ref = block_reference(x, params, n_head)
    assert out.shape == (B, T, C)
    # bf16 matmul operands / bf16 intermediates (f32 accumulation) vs f32 ref.
    assert jnp.allclose(out, ref, atol=5e-2, rtol=5e-2), \
        float(jnp.max(jnp.abs(out - ref)))

    print("KERNEL_OK")
</pallas_src>

<mosaic_0001>
module attributes {stable_mosaic.version = 11 : i64} {
  func.func @ln_qkv_kernel(%arg0: i32, %arg1: i32, %arg2: memref<16x32xf32, #tpu.memory_space<vmem>>, %arg3: memref<1x32xf32, #tpu.memory_space<vmem>>, %arg4: memref<1x32xf32, #tpu.memory_space<vmem>>, %arg5: memref<32x96xbf16, #tpu.memory_space<vmem>>, %arg6: memref<1x96xf32, #tpu.memory_space<vmem>>, %arg7: memref<16x96xbf16, #tpu.memory_space<vmem>>) attributes {dimension_semantics = [#tpu.dimension_semantics<parallel>, #tpu.dimension_semantics<parallel>], iteration_bounds = array<i64: 1, 1>, scalar_prefetch = 0 : i64, scratch_operands = 0 : i64, tpu.core_type = #tpu.core_type<tc>, window_params = [{transform_indices = @transform_0, window_bounds = array<i64: 16, 32>}, {pipeline_mode = #tpu.pipeline_mode<synchronous>, transform_indices = @transform_1, window_bounds = array<i64: 1, 32>}, {pipeline_mode = #tpu.pipeline_mode<synchronous>, transform_indices = @transform_2, window_bounds = array<i64: 1, 32>}, {transform_indices = @transform_3, window_bounds = array<i64: 32, 96>}, {transform_indices = @transform_4, window_bounds = array<i64: 1, 96>}, {transform_indices = @transform_5, window_bounds = array<i64: 16, 96>}]} {
    %c0 = arith.constant 0 : index
    %c0_0 = arith.constant 0 : index
    %0 = vector.load %arg2[%c0, %c0_0] : memref<16x32xf32, #tpu.memory_space<vmem>>, vector<16x32xf32>
    %c0_1 = arith.constant 0 : index
    %c0_2 = arith.constant 0 : index
    %1 = vector.load %arg3[%c0_1, %c0_2] : memref<1x32xf32, #tpu.memory_space<vmem>>, vector<1x32xf32>
    %c0_3 = arith.constant 0 : index
    %c0_4 = arith.constant 0 : index
    %2 = vector.load %arg4[%c0_3, %c0_4] : memref<1x32xf32, #tpu.memory_space<vmem>>, vector<1x32xf32>
    %cst = arith.constant dense<0.000000e+00> : vector<16xf32>
    %3 = vector.multi_reduction <add>, %0, %cst [1] : vector<16x32xf32> to vector<16xf32>
    %4 = vector.shape_cast %3 : vector<16xf32> to vector<16x1xf32>
    %cst_5 = arith.constant 3.200000e+01 : f32
    %5 = vector.broadcast %cst_5 : f32 to vector<16x1xf32>
    %6 = arith.divf %4, %5 : vector<16x1xf32>
    %7 = vector.broadcast %6 : vector<16x1xf32> to vector<16x32xf32>
    %8 = arith.subf %0, %7 : vector<16x32xf32>
    %9 = arith.mulf %8, %8 : vector<16x32xf32>
    %cst_6 = arith.constant dense<0.000000e+00> : vector<16xf32>
    %10 = vector.multi_reduction <add>, %9, %cst_6 [1] : vector<16x32xf32> to vector<16xf32>
    %11 = vector.shape_cast %10 : vector<16xf32> to vector<16x1xf32>
    %cst_7 = arith.constant 3.200000e+01 : f32
    %12 = vector.broadcast %cst_7 : f32 to vector<16x1xf32>
    %13 = arith.divf %11, %12 : vector<16x1xf32>
    %cst_8 = arith.constant 9.99999974E-6 : f32
    %14 = vector.broadcast %cst_8 : f32 to vector<16x1xf32>
    %15 = arith.addf %13, %14 : vector<16x1xf32>
    %16 = math.rsqrt %15 : vector<16x1xf32>
    %17 = vector.broadcast %16 : vector<16x1xf32> to vector<16x32xf32>
    %18 = arith.mulf %8, %17 : vector<16x32xf32>
    %19 = vector.broadcast %1 : vector<1x32xf32> to vector<16x32xf32>
    %20 = arith.mulf %18, %19 : vector<16x32xf32>
    %21 = vector.broadcast %2 : vector<1x32xf32> to vector<16x32xf32>
    %22 = arith.addf %20, %21 : vector<16x32xf32>
    %23 = arith.truncf %22 : vector<16x32xf32> to vector<16x32xbf16>
    %c0_9 = arith.constant 0 : index
    %c0_10 = arith.constant 0 : index
    %24 = vector.load %arg5[%c0_9, %c0_10] : memref<32x96xbf16, #tpu.memory_space<vmem>>, vector<32x96xbf16>
    %cst_11 = arith.constant dense<0.000000e+00> : vector<16x96xf32>
    %25 = tpu.matmul %23, %24, %cst_11 {dimension_numbers = #tpu.dot_dimension_numbers<[1], [0], [0], [1], [0, 0, 1, 1], [], []>} : vector<16x32xbf16>, vector<32x96xbf16>, vector<16x96xf32> -> vector<16x96xf32>
    %c0_12 = arith.constant 0 : index
    %c0_13 = arith.constant 0 : index
    %26 = vector.load %arg6[%c0_12, %c0_13] : memref<1x96xf32, #tpu.memory_space<vmem>>, vector<1x96xf32>
    %27 = vector.broadcast %26 : vector<1x96xf32> to vector<16x96xf32>
    %28 = arith.addf %25, %27 : vector<16x96xf32>
    %29 = arith.truncf %28 : vector<16x96xf32> to vector<16x96xbf16>
    %c0_14 = arith.constant 0 : index
    %c0_15 = arith.constant 0 : index
    %30 = vector.load %arg7[%c0_14, %c0_15] : memref<16x96xbf16, #tpu.memory_space<vmem>>, vector<16x96xbf16>
    tpu.vector_store %arg7[%c0_14, %c0_15], %29 {strides = array<i32>} : memref<16x96xbf16, #tpu.memory_space<vmem>>, vector<16x96xbf16>,
    return
  }
  func.func @transform_0(%arg0: i32, %arg1: i32) -> (i32, i32) {
    %c0_i32 = arith.constant 0 : i32
    %c0_i32_0 = arith.constant 0 : i32
    return %arg0, %c0_i32 : i32, i32
  }
  func.func @transform_1(%arg0: i32, %arg1: i32) -> (i32, i32) {
    %c0_i32 = arith.constant 0 : i32
    %c0_i32_0 = arith.constant 0 : i32
    %c0_i32_1 = arith.constant 0 : i32
    return %c0_i32, %c0_i32_0 : i32, i32
  }
  func.func @transform_2(%arg0: i32, %arg1: i32) -> (i32, i32) {
    %c0_i32 = arith.constant 0 : i32
    %c0_i32_0 = arith.constant 0 : i32
    %c0_i32_1 = arith.constant 0 : i32
    return %c0_i32, %c0_i32_0 : i32, i32
  }
  func.func @transform_3(%arg0: i32, %arg1: i32) -> (i32, i32) {
    %c0_i32 = arith.constant 0 : i32
    %c0_i32_0 = arith.constant 0 : i32
    return %c0_i32, %arg1 : i32, i32
  }
  func.func @transform_4(%arg0: i32, %arg1: i32) -> (i32, i32) {
    %c0_i32 = arith.constant 0 : i32
    %c0_i32_0 = arith.constant 0 : i32
    return %c0_i32, %arg1 : i32, i32
  }
  func.func @transform_5(%arg0: i32, %arg1: i32) -> (i32, i32) {
    %c0_i32 = arith.constant 0 : i32
    return %arg0, %arg1 : i32, i32
  }
}

</mosaic_0001>

<bundles_post_ra>
// kernel: tpu_custom_call.1
= control target key start
LH: loop header
LB: loop body
LE: loop exit
PB: predicated region body
PF: predicated region fallthrough
CT: control target
= control target key end

     0   :  { %10 = vsyncpa [#allocation3], 0  ;;  %s398_s0 = inlined_call_operand.hbm [shape: f32[16,32], index: 0, kind: input, shape index: {}]   ;;  %s399_s1 = inlined_call_operand.vmem [shape: f32[1,32], index: 1, kind: input, shape index: {}]   ;;  %s400_s2 = inlined_call_operand.vmem [shape: f32[1,32], index: 2, kind: input, shape index: {}]   ;;  %s401_s3 = inlined_call_operand.hbm [shape: bf16[32,96], index: 3, kind: input, shape index: {}]   ;;  %s402_s4 = inlined_call_operand.vmem [shape: f32[1,96], index: 4, kind: input, shape index: {}]   ;;  %s403_s5 = inlined_call_operand.hbm [shape: bf16[16,96], index: 5, kind: output, shape index: {}]  }
   0x1   :  { %11 = vsyncpa [#allocation6], 0 }
   0x2   :  { %12 = vsyncpa [#allocation4], 0  ;;  %s303_s18 = smov [#allocation2]   ;;  %s231_s22 = scalar_lea.hbm %s398_s0, 256 }
   0x3   :  { %s18_s19 = sshll.u32 %s303_s18, 4  ;;  %p232_p0 = scmp.ne.s32.totalorder %s398_s0, %s231_s22  ;;  %s19_s19 = int_to_ptr.vmem [resolvable:$true] %s18_s19 }
   0x4   :  { %p235_p1 = scmp.lt.u32.totalorder %s231_s22, %s398_s0 }
   0x6   :  { %p237_p2 = pnand %p235_p1, %p232_p0 }
   0x8   :  { %240 = shalt.err (!%p237_p2)
}
   0x9   :  { %s241_s27 = scalar_lea.vmem %s19_s19, 256  ;;  %p246_p4 = scmp.lt.s32.totalorder %s19_s19, %s19_s19 }
   0xa   :  { %p242_p3 = scmp.ne.s32.totalorder %s19_s19, %s241_s27  ;;  %p247_p5 = scmp.lt.s32.totalorder %s241_s27, %s241_s27 }
   0xc   :  { %p248_p6 = por %p247_p5, %p246_p4 }
   0xe   :  { %p249_p7 = pnand %p248_p6, %p242_p3 }
  0x10   :  { %252 = shalt.err (!%p249_p7)
}
  0x11   :  { %s304_s28 = smov 128   ;;  %s305_s29 = smov 8  }
  0x12   :  { %24 = dma.hbm_to_vmem [thread:$0]  %s398_s0, 256, %s19_s19, [#allocation3], %s304_s28, %s304_s28, %s305_s29  }
  0x13   :  { %s306_s7 = smov [#allocation5]   ;;  %s253_s11 = scalar_lea.hbm %s401_s3, 256 }
  0x14   :  { %s34_s8 = sshll.u32 %s306_s7, 4  ;;  %p254_p8 = scmp.ne.s32.totalorder %s401_s3, %s253_s11  ;;  %s35_s8 = int_to_ptr.vmem [resolvable:$true] %s34_s8 }
  0x15   :  { %p257_p9 = scmp.lt.u32.totalorder %s253_s11, %s401_s3 }
  0x17   :  { %p259_p10 = pnand %p257_p9, %p254_p8 }
  0x19   :  { %262 = shalt.err (!%p259_p10)
}
  0x1a   :  { %s263_s16 = scalar_lea.vmem %s35_s8, 256  ;;  %p268_p12 = scmp.lt.s32.totalorder %s35_s8, %s35_s8 }
  0x1b   :  { %p264_p11 = scmp.ne.s32.totalorder %s35_s8, %s263_s16  ;;  %p269_p13 = scmp.lt.s32.totalorder %s263_s16, %s263_s16 }
  0x1d   :  { %p270_p0 = por %p269_p13, %p268_p12 }
  0x1f   :  { %p271_p1 = pnand %p270_p0, %p264_p11 }
  0x21   :  { %274 = shalt.err (!%p271_p1)
}
  0x22   :  { %s307_s0 = smov 64   ;;  %s308_s17 = smov 4  }
  0x23   :  { %40 = dma.hbm_to_vmem [thread:$0]  %s401_s3, 256, %s35_s8, [#allocation6], %s307_s0, %s307_s0, %s308_s17  }
  0x24   :  { %297 = dma.done.wait [#allocation3], 256  }
  0x25   :  { %298 = vsyncadd [#allocation3], 4294967040 }
  0x26   :  { %299 = dma.done.wait [#allocation6], 256  }
  0x27   :  { %300 = vsyncadd [#allocation6], 4294967040  ;;  %vm54_vm0 = vcmask 261120   ;;  %v50_v0 = vld [vmem:[#allocation2] sm:$0xff]  ;;  %v51_v1 = vld [vmem:[#allocation2 + $0x8] sm:$0xff]  ;;  %v309_v15 = vmov 0.0  }
  0x28   :  { %v55_v2 = vsel %vm54_vm0, %v50_v0, 0.0  ;;  %v58_v3 = vsel %vm54_vm0, %v51_v1, 0.0  ;;  %v225_v14 = vld [vmem:[#allocation5] sm:$0xff]   ;;  %208 = vmatprep.subr.bf16.mxu0 %v309_v15  ;;  %v226_v16 = vld [vmem:[#allocation5 + $0x8] sm:$0xff]   ;;  %vm310_vm1 = vmmov 0   ;;  %vm174_vm2 = vcmask 781312  }
  0x29   :  { %56 = vadd.xlane.f32.xlu0 %v55_v2  ;;  %209 = vmatpush3.bf16.msra.mxu0 %v225_v14  ;;  %v195_v25 = vld [vmem:[%s399_s1] ss:$0 sm:$0xff]  ;;  %s311_s1 = smov [#allocation7]  }
  0x2a   :  { %212 = vmatprep.mubr.msk.bf16.mxu0 %vm310_vm1, %v309_v15  ;;  %210 = vmatprep.subr.bf16.mxu0 %v309_v15  ;;  %v196_v29 = vld [vmem:[%s400_s2] ss:$0 sm:$0xff]  ;;  %s182_s25 = sshll.u32 %s311_s1, 4  ;;  %s183_s25 = int_to_ptr.vmem [resolvable:$true] %s182_s25 }
  0x2b   :  { %v197_v34 = vld [vmem:[%s402_s4] ss:$0 sm:$0xff]  ;;  %s275_s2 = scalar_lea.vmem %s183_s25, 128  ;;  %p280_p3 = scmp.lt.s32.totalorder %s183_s25, %s183_s25 }
  0x2c   :  { %p276_p2 = scmp.ne.s32.totalorder %s183_s25, %s275_s2  ;;  %p281_p4 = scmp.lt.s32.totalorder %s275_s2, %s275_s2 }
  0x2d   :  { %59 = vadd.xlane.f32.xlu0 %v58_v3  ;;  %211 = vmatpush3.bf16.msra.mxu0 %v226_v16 }
  0x2e   :  { %p282_p5 = por %p281_p4, %p280_p3 }
  0x30   :  { %p283_p6 = pnand %p282_p5, %p276_p2 }
  0xb6   :  { %v57_v4 = vpop.xlane.xlu0 %56 }
  0xb7   :  { %v62_v5 = vmul.f32 0.03125, %v57_v4 }
  0xb9   :  { %v64_v6 = vsub.f32 %v50_v0, %v62_v5 }
  0xba   :  { %v60_v7 = vpop.xlane.xlu0 %59 }
  0xbb   :  { %v63_v8 = vmul.f32 0.03125, %v60_v7  ;;  %v66_v9 = vmul.f32 %v64_v6, %v64_v6 }
  0xbd   :  { %v65_v10 = vsub.f32 %v51_v1, %v63_v8  ;;  %v68_v11 = vsel %vm54_vm0, %v66_v9, 0.0 }
  0xbe   :  { %69 = vadd.xlane.f32.xlu1 %v68_v11 }
  0xbf   :  { %v67_v12 = vmul.f32 %v65_v10, %v65_v10 }
  0xc1   :  { %v71_v13 = vsel %vm54_vm0, %v67_v12, 0.0 }
  0xc2   :  { %72 = vadd.xlane.f32.xlu1 %v71_v13 }
 0x14b   :  { %v70_v17 = vpop.xlane.xlu1 %69 }
 0x14c   :  { %v74_v18 = vmul.f32 0.03125, %v70_v17 }
 0x14e   :  { %v76_v19 = vadd.f32 1e-05, %v74_v18 }
 0x14f   :  { %v73_v20 = vpop.xlane.xlu1 %72 }
 0x150   :  { %227 = vrsqrt.f32 %v76_v19  ;;  %v75_v21 = vmul.f32 0.03125, %v73_v20 }
 0x152   :  { %v77_v22 = vadd.f32 1e-05, %v75_v21 }
 0x154   :  { %229 = vrsqrt.f32 %v77_v22 }
 0x15a   :  { %v228_v23 = vpop.eup %227 }
 0x15b   :  { %v80_v24 = vmul.f32 %v228_v23, %v64_v6 }
 0x15d   :  { %v88_v28 = vmul.f32 %v195_v25, %v80_v24 }
 0x15e   :  { %v230_v26 = vpop.eup %229 }
 0x15f   :  { %v81_v27 = vmul.f32 %v230_v26, %v65_v10  ;;  %v96_v31 = vadd.f32 %v196_v29, %v88_v28 }
 0x161   :  { %v89_v30 = vmul.f32 %v195_v25, %v81_v27 }
 0x163   :  { %v97_v32 = vadd.f32 %v196_v29, %v89_v30 }
 0x165   :  { %v98_v33 = vpack.c.bf16 %v97_v32, %v96_v31 }
 0x167   :  { %213 = vmatmul.mubr.msk.bf16.vlgmr.msra.gmra.mrb[0].mxu0 %vm54_vm0, %v98_v33 }
 0x23a   :  { %v159_v35 = vpop.f32.mrb[0].mxu0 }
 0x23b   :  { %v160_v36 = vadd.f32 %v197_v34, %v159_v35  ;;  %v214_v37 = vpop.f32.mrb[1].mxu0 }
 0x23c   :  { %v162_v38 = vpop.f32.mrb[2].mxu0 }
 0x23d   :  { %v203_v39 = vpack.c.bf16 %v160_v36, %v160_v36  ;;  %v163_v40 = vadd.f32 %v197_v34, %v162_v38  ;;  %v215_v41 = vpop.f32.mrb[3].mxu0 }
 0x23f   :  { %v204_v42 = vpack.c.bf16 %v163_v40, %v163_v40  ;;  %175 = vst.msk [vmem:[#allocation7] sm:$0xf] %vm174_vm2, %v203_v39 }
 0x241   :  { %176 = vst.msk [vmem:[#allocation7 + $0x4] sm:$0xf] %vm174_vm2, %v204_v42 }
 0x242   :  { %286 = shalt.err (!%p283_p6)
}
 0x243   :  { %s287_s27 = scalar_lea.hbm %s403_s5, 128 }
 0x244   :  { %p288_p7 = scmp.ne.s32.totalorder %s403_s5, %s287_s27  ;;  %p291_p8 = scmp.lt.u32.totalorder %s287_s27, %s403_s5 }
 0x246   :  { %p293_p9 = pnand %p291_p8, %p288_p7 }
 0x248   :  { %296 = shalt.err (!%p293_p9)
}
 0x249   :  { %188 = dma.vmem_to_hbm [thread:$0]  %s183_s25, 128, %s403_s5, [#allocation4], %s307_s0, %s307_s0, %s308_s17  }
 0x24a   :  { %301 = dma.done.wait [#allocation4], 128  }
 0x24b   :  { %302 = vsyncadd [#allocation4], 4294967168 }
 0x24c   :  { %192 = vsyncpa [#allocation3], 1 }
 0x24d   :  { %193 = vsyncpa [#allocation6], 1 }
 0x24e   :  { %194 = vsyncpa [#allocation4], 1 }

</bundles_post_ra>
